<compile_context>
chip_gen: v7x
topology: tpu7x:2x2x1
jax: 0.10.0
libtpu: 0.0.40
codegen_flags: <defaults>
</compile_context>

<pallas_src>
import math

import jax
import jax.numpy as jnp
from jax.experimental import pallas as pl
from jax.experimental.pallas import tpu as pltpu


def _dc_kernel(w_ref, pred_ref, ref_ref, mask_ref, o_ref):
    """One (batch, row-tile) grid step.

    pred/ref/out blocks: (1, C, tile_rows, lanes)
    mask block         : (1,    tile_rows, lanes)  -- shared across the C coils
    w_ref              : (1, 1) float32 scalar in SMEM
    """
    w = w_ref[0, 0]
    pred = pred_ref[...].astype(jnp.float32)
    refk = ref_ref[...].astype(jnp.float32)
    m = mask_ref[...].astype(jnp.float32)[:, None, :, :]  # broadcast over coil dim
    # (1-m)*pred + m*ref  ==  pred + m*(ref - pred)   (fewer VALU ops, same NaN semantics)
    out = (pred + m * (refk - pred)) * w
    o_ref[...] = out.astype(o_ref.dtype)


_LANE_CHOICES = (1024, 512, 256, 128)


def _pick_lanes(total):
    """Widest lane count (multiple of 128) that divides `total`, else None."""
    for lanes in _LANE_CHOICES:
        if total % lanes == 0:
            return lanes
    return None


def _dc_call(w2d, pred4, ref4, mask3):
    """pred4/ref4: (B, C, rows, lanes); mask3: (Bm, rows, lanes), Bm in {1, B}."""
    B, C, rows, lanes = pred4.shape
    Bm = mask3.shape[0]
    dtype = pred4.dtype
    itemsize = jnp.dtype(dtype).itemsize

    # Sublane granularity for the row tile (8 for 32-bit, 16 for bf16, 32 for int8).
    sub = max(8, 32 // itemsize)

    # Per grid step we stream pred + ref + out (C coils each) plus one mask tile.
    # Target ~12 MiB per step (~3-4 MiB per big operand block): double-buffered
    # working set ~24 MiB, amortizing the ~0.35us per-step overhead while staying
    # well inside v7x's 64 MiB physical VMEM (and v5e/v6e's 128 MiB).
    step_bytes_per_row = (3 * C + 1) * lanes * itemsize
    target_step_bytes = 12 << 20
    tile_rows = max(sub, (target_step_bytes // step_bytes_per_row) // sub * sub)
    tile_rows = min(tile_rows, rows)  # == rows (full dim) when the slab is small

    grid = (B, pl.cdiv(rows, tile_rows))

    big_spec = pl.BlockSpec((1, C, tile_rows, lanes), lambda b, t: (b, 0, t, 0))
    if Bm == B:
        mask_spec = pl.BlockSpec((1, tile_rows, lanes), lambda b, t: (b, t, 0))
    else:  # mask also broadcast over batch
        mask_spec = pl.BlockSpec((1, tile_rows, lanes), lambda b, t: (0, t, 0))

    return pl.pallas_call(
        _dc_kernel,
        out_shape=jax.ShapeDtypeStruct((B, C, rows, lanes), dtype),
        grid=grid,
        in_specs=[
            pl.BlockSpec(memory_space=pltpu.SMEM),  # dc_weight scalar (1,1) f32
            big_spec,                               # pred_kspace
            big_spec,                               # ref_kspace
            mask_spec,                              # compressed mask
        ],
        out_specs=big_spec,
        compiler_params=pltpu.CompilerParams(
            dimension_semantics=("parallel", "parallel"),
            vmem_limit_bytes=48 << 20,
        ),
    )(w2d, pred4, ref4, mask3)


def data_consistency(pred_kspace, ref_kspace, mask, dc_weight):
    """out = ((1 - mask) * pred_kspace + mask * ref_kspace) * dc_weight (scalar weight)."""
    pred_kspace = jnp.asarray(pred_kspace)
    ref_kspace = jnp.asarray(ref_kspace)
    mask = jnp.asarray(mask)
    assert pred_kspace.shape == ref_kspace.shape, "pred and ref kspace must match"
    shape = pred_kspace.shape
    dtype = pred_kspace.dtype

    # Scalar parameter stays float32 in SMEM (matches torch.nn.Parameter(torch.ones(1))).
    # TODO(synk): no custom_vjp -- forward-pass only; gradients do not flow through.
    w2d = jnp.asarray(dc_weight, dtype=jnp.float32).reshape(1, 1)

    # Align mask rank with pred (numpy broadcasting aligns from the right).
    if mask.ndim < pred_kspace.ndim:
        mask = mask.reshape((1,) * (pred_kspace.ndim - mask.ndim) + mask.shape)

    # ---- fast path: VSNet layout (B, C, *inner) with the mask compressed over the
    # coil dim, e.g. pred (B, C, H, W, 2) / mask (B, 1, H, W, 1).  The mask is only
    # broadcast over the trailing inner dims (cheap: 1/C of pred size) and never
    # over coils -- the kernel reuses one mask tile for all C coils per block.
    if pred_kspace.ndim >= 3 and mask.ndim == pred_kspace.ndim:
        B, C = shape[0], shape[1]
        inner_shape = shape[2:]
        inner = math.prod(inner_shape)
        lanes = _pick_lanes(inner)
        mask_ok = (
            mask.shape[0] in (1, B)
            and mask.shape[1] == 1
            and all(ms in (1, ps) for ms, ps in zip(mask.shape[2:], inner_shape))
        )
        if lanes is not None and mask_ok:
            rows = inner // lanes
            pred4 = pred_kspace.reshape(B, C, rows, lanes)
            ref4 = ref_kspace.reshape(B, C, rows, lanes)
            Bm = mask.shape[0]
            # TODO(synk): for strictly-binary masks this stream could be int8/bf16 for
            # a few % less HBM traffic; kept at pred dtype to preserve exact numerics
            # for arbitrary (non-binary) masks.
            mask3 = (
                jnp.broadcast_to(mask[:, 0], (Bm,) + inner_shape)
                .astype(dtype)
                .reshape(Bm, rows, lanes)
            )
            out4 = _dc_call(w2d, pred4, ref4, mask3)
            return out4.reshape(shape)

    # ---- generic fallback: fully broadcast mask, flatten to a lane-dense slab.
    # TODO(synk): ragged sizes take an extra HBM pass for the pad/copy and the mask
    # is streamed at full size here (only hit for non-VSNet / non-128-divisible shapes).
    mask_full = jnp.broadcast_to(mask, shape).astype(dtype)
    total = pred_kspace.size
    lanes = _pick_lanes(total) or 128
    pad = (-total) % lanes
    rows = (total + pad) // lanes

    def to_flat(a):
        flat = a.reshape(-1)
        if pad:
            flat = jnp.pad(flat, (0, pad))
        return flat

    pred4 = to_flat(pred_kspace).reshape(1, 1, rows, lanes)
    ref4 = to_flat(ref_kspace).reshape(1, 1, rows, lanes)
    mask3 = to_flat(mask_full).reshape(1, rows, lanes)
    out_flat = _dc_call(w2d, pred4, ref4, mask3).reshape(-1)
    if pad:
        out_flat = out_flat[:total]
    return out_flat.reshape(shape)


if __name__ == "__main__":
    key = jax.random.PRNGKey(0)
    kp, kr, km = jax.random.split(key, 3)

    # VSNet-like kspace shapes: (batch=2, coils=4, H=16, W=16, complex=2);
    # the sampling mask broadcasts over the coil and complex dims.
    B, C, H, W = 2, 4, 16, 16
    pred_kspace = jax.random.normal(kp, (B, C, H, W, 2), dtype=jnp.float32)
    ref_kspace = jax.random.normal(kr, (B, C, H, W, 2), dtype=jnp.float32)
    mask = (jax.random.uniform(km, (B, 1, H, W, 1)) > 0.5).astype(jnp.float32)

    # Matches torch.nn.Parameter(torch.ones(1)).
    dc_weight = jnp.ones((1,), dtype=jnp.float32)

    out = data_consistency(pred_kspace, ref_kspace, mask, dc_weight)
    out = jax.block_until_ready(out)

    ref_out = ((1.0 - mask) * pred_kspace + mask * ref_kspace) * dc_weight[0]
    assert out.shape == pred_kspace.shape
    assert jnp.allclose(out, ref_out, atol=1e-5, rtol=1e-5), "mismatch vs reference (fast path)"

    # Also exercise the generic fallback path (ragged inner size -> flat slab + pad).
    H2, W2 = 5, 7
    pred2 = jax.random.normal(kp, (B, C, H2, W2, 2), dtype=jnp.float32)
    ref2 = jax.random.normal(kr, (B, C, H2, W2, 2), dtype=jnp.float32)
    mask2 = (jax.random.uniform(km, (B, 1, H2, W2, 1)) > 0.5).astype(jnp.float32)
    out2 = jax.block_until_ready(data_consistency(pred2, ref2, mask2, dc_weight))
    ref2_out = ((1.0 - mask2) * pred2 + mask2 * ref2) * dc_weight[0]
    assert jnp.allclose(out2, ref2_out, atol=1e-5, rtol=1e-5), "mismatch vs reference (fallback)"

    print("KERNEL_OK")
</pallas_src>

<mosaic_0001>
module attributes {stable_mosaic.version = 11 : i64} {
  func.func @_dc_kernel(%arg0: i32, %arg1: i32, %arg2: memref<1x1xf32, #tpu.memory_space<smem>>, %arg3: memref<1x4x1x512xf32, #tpu.memory_space<vmem>>, %arg4: memref<1x4x1x512xf32, #tpu.memory_space<vmem>>, %arg5: memref<1x1x512xf32, #tpu.memory_space<vmem>>, %arg6: memref<1x4x1x512xf32, #tpu.memory_space<vmem>>) attributes {dimension_semantics = [#tpu.dimension_semantics<parallel>, #tpu.dimension_semantics<parallel>], iteration_bounds = array<i64: 2, 1>, scalar_prefetch = 0 : i64, scratch_operands = 0 : i64, tpu.core_type = #tpu.core_type<tc>, window_params = [{transform_indices = @transform_0, window_bounds = array<i64: 1, 1>}, {transform_indices = @transform_1, window_bounds = array<i64: 1, 4, 1, 512>}, {transform_indices = @transform_2, window_bounds = array<i64: 1, 4, 1, 512>}, {transform_indices = @transform_3, window_bounds = array<i64: 1, 1, 512>}, {transform_indices = @transform_4, window_bounds = array<i64: 1, 4, 1, 512>}]} {
    %c0 = arith.constant 0 : index
    %c0_0 = arith.constant 0 : index
    %0 = memref.load %arg2[%c0, %c0_0] : memref<1x1xf32, #tpu.memory_space<smem>>
    %c0_1 = arith.constant 0 : index
    %c0_2 = arith.constant 0 : index
    %c0_3 = arith.constant 0 : index
    %c0_4 = arith.constant 0 : index
    %1 = vector.load %arg3[%c0_1, %c0_2, %c0_3, %c0_4] : memref<1x4x1x512xf32, #tpu.memory_space<vmem>>, vector<1x4x1x512xf32>
    %c0_5 = arith.constant 0 : index
    %c0_6 = arith.constant 0 : index
    %c0_7 = arith.constant 0 : index
    %c0_8 = arith.constant 0 : index
    %2 = vector.load %arg4[%c0_5, %c0_6, %c0_7, %c0_8] : memref<1x4x1x512xf32, #tpu.memory_space<vmem>>, vector<1x4x1x512xf32>
    %c0_9 = arith.constant 0 : index
    %c0_10 = arith.constant 0 : index
    %c0_11 = arith.constant 0 : index
    %3 = vector.load %arg5[%c0_9, %c0_10, %c0_11] : memref<1x1x512xf32, #tpu.memory_space<vmem>>, vector<1x1x512xf32>
    %4 = vector.shape_cast %3 : vector<1x1x512xf32> to vector<1x1x1x512xf32>
    %5 = arith.subf %2, %1 : vector<1x4x1x512xf32>
    %6 = vector.broadcast %4 : vector<1x1x1x512xf32> to vector<1x4x1x512xf32>
    %7 = arith.mulf %6, %5 : vector<1x4x1x512xf32>
    %8 = arith.addf %1, %7 : vector<1x4x1x512xf32>
    %9 = vector.broadcast %0 : f32 to vector<1x4x1x512xf32>
    %10 = arith.mulf %8, %9 : vector<1x4x1x512xf32>
    %c0_12 = arith.constant 0 : index
    %c0_13 = arith.constant 0 : index
    %c0_14 = arith.constant 0 : index
    %c0_15 = arith.constant 0 : index
    %11 = vector.load %arg6[%c0_12, %c0_13, %c0_14, %c0_15] : memref<1x4x1x512xf32, #tpu.memory_space<vmem>>, vector<1x4x1x512xf32>
    tpu.vector_store %arg6[%c0_12, %c0_13, %c0_14, %c0_15], %10 {strides = array<i32>} : memref<1x4x1x512xf32, #tpu.memory_space<vmem>>, vector<1x4x1x512xf32>,
    return
  }
  func.func @transform_0(%arg0: i32, %arg1: i32) -> (i32, i32) {
    %c0_i32 = arith.constant 0 : i32
    %c0_i32_0 = arith.constant 0 : i32
    %c0_i32_1 = arith.constant 0 : i32
    return %c0_i32, %c0_i32_0 : i32, i32
  }
  func.func @transform_1(%arg0: i32, %arg1: i32) -> (i32, i32, i32, i32) {
    %c0_i32 = arith.constant 0 : i32
    %c0_i32_0 = arith.constant 0 : i32
    %c0_i32_1 = arith.constant 0 : i32
    return %arg0, %c0_i32, %arg1, %c0_i32_0 : i32, i32, i32, i32
  }
  func.func @transform_2(%arg0: i32, %arg1: i32) -> (i32, i32, i32, i32) {
    %c0_i32 = arith.constant 0 : i32
    %c0_i32_0 = arith.constant 0 : i32
    %c0_i32_1 = arith.constant 0 : i32
    return %arg0, %c0_i32, %arg1, %c0_i32_0 : i32, i32, i32, i32
  }
  func.func @transform_3(%arg0: i32, %arg1: i32) -> (i32, i32, i32) {
    %c0_i32 = arith.constant 0 : i32
    %c0_i32_0 = arith.constant 0 : i32
    return %arg0, %arg1, %c0_i32 : i32, i32, i32
  }
  func.func @transform_4(%arg0: i32, %arg1: i32) -> (i32, i32, i32, i32) {
    %c0_i32 = arith.constant 0 : i32
    %c0_i32_0 = arith.constant 0 : i32
    %c0_i32_1 = arith.constant 0 : i32
    return %arg0, %c0_i32, %arg1, %c0_i32_0 : i32, i32, i32, i32
  }
}

</mosaic_0001>

<bundles_post_ra>
// kernel: tpu_custom_call.1
= control target key start
LH: loop header
LB: loop body
LE: loop exit
PB: predicated region body
PF: predicated region fallthrough
CT: control target
= control target key end

     0   :  { %s1015_s0 = inlined_call_operand.<no memory space> [shape: f32[1,1], index: 0, kind: input, shape index: {}]   ;;  %s1016_s1 = inlined_call_operand.hbm [shape: f32[2,4,1,512], index: 1, kind: input, shape index: {}]   ;;  %s1017_s2 = inlined_call_operand.hbm [shape: f32[2,4,1,512], index: 2, kind: input, shape index: {}]   ;;  %s1018_s3 = inlined_call_operand.vmem [shape: f32[2,1,512], index: 3, kind: input, shape index: {}]   ;;  %s1019_s4 = inlined_call_operand.hbm [shape: f32[2,4,1,512], index: 4, kind: output, shape index: {}]  }
   0x1   :  { %9 = sst [smem:[#allocation2]] %s1015_s0 }
   0x2   :  { %10 = vsyncpa [#allocation4], 0 }
   0x3   :  { %12 = vsyncpa [#allocation4 + $0x1], 0 }
   0x4   :  { %13 = vsyncpa [#allocation7], 0 }
   0x5   :  { %15 = vsyncpa [#allocation7 + $0x1], 0 }
   0x6   :  { %16 = vsyncpa [#allocation5], 0 }
   0x7   :  { %18 = vsyncpa [#allocation5 + $0x1], 0  ;;  %s769_s17 = smov 0   ;;  %s771_s18 = smov 0  }
   0x8   :  { %s773_s19 = smov 0   ;;  %s775_s20 = smov 0  }
   0x9   :  { %s777_s21 = smov 0   ;;  %s779_s22 = smov 0  }
   0xa LB: > { %s492_s0 = sadd.s32 4294967295, %s732_s22   ;;  %s493_s23 = sadd.s32 4294967294, %s732_s22   ;;  %s732_s22 = sphi %s779_s22, %s24_s22   ;;  %s728_s21 = sphi %s777_s21, %s1037_s21   ;;  %s724_s20 = sphi %s775_s20, %s1036_s20   ;;  %s720_s19 = sphi %s773_s19, %s1035_s19   ;;  %s716_s18 = sphi %s771_s18, %s1034_s18   ;;  %s712_s17 = sphi %s769_s17, %s1033_s17  }
   0xb   : > { %s36_s24 = sadd.s32 1, %s728_s21  ;;  %s66_s25 = sadd.s32 1, %s720_s19 }
   0xc   : > { %p38_p0 = scmp.ge.s32.totalorder %s36_s24, 2  ;;  %p73_p1 = scmp.ne.s32.totalorder %s720_s19, %s716_s18 }
   0xd   : > { %p74_p2 = scmp.eq.s32.totalorder %s732_s22, 0  ;;  %p79_p3 = scmp.ne.s32.totalorder %s716_s18, %s712_s17 }
   0xe   : > { %s1039_s24 = smov (%p38_p0, %s36_s24), 0  ;;  %p80_p5 = scmp.eq.s32.totalorder %s492_s0, 0 }
   0xf   : > { %p810_p4 = por %p74_p2, %p73_p1  ;;  %s61_s27 = ssub.s32 %s728_s21, %s1039_s24 }
  0x10   : > { %p161_p6 = scmp.eq.s32.totalorder %s492_s0, 1  ;;  %p64_p7 = scmp.eq.s32.totalorder %s61_s27, 0 }
  0x11   : > { %p816_p8 = por %p80_p5, %p79_p3  ;;  %p167_p10 = scmp.eq.s32.totalorder %s493_s23, 1 }
  0x12   : > { %p820_p9 = por %p161_p6, %p73_p1  ;;  %p532_p13 = scmp.lt.s32.totalorder %s732_s22, 2 }
  0x13   : > { %s1023_s28 = scalar_select %p816_p8, 1, 0 }
  0x14   : > { %s1024_s29 = scalar_select %p820_p9, 1, 0 }
  0x15   : > { %s825_s30 = scalar_select %p64_p7, %s720_s19, %s66_s25  }
  0x16   : > { %p827_p11 = por %p167_p10, %p79_p3  ;;  %s834_s6 = sand.u32 1, %s720_s19  }
  0x17   : > { %s496_s7 = sshll.u32 %s834_s6, 4  ;;  %s512_s8 = sshll.u32 %s728_s21, 8 }
  0x18   : > { %s1025_s5 = scalar_select %p827_p11, 1, 0 }
  0x19   : > { %s843_s11 = scalar_lea.hbm %s1016_s1, %s512_s8  ;;  %s194_s12 = scalar_lea.vmem [#allocation3], %s496_s7 }
  0x1a   : > { %s203_s13 = sshll.u32 %s194_s12, 4  ;;  %p851_p0 = pnand %p532_p13, %p810_p4  ;;  %s847_s13 = int_to_ptr.vmem [resolvable:$true] %s203_s13 }
  0x1b   : > { %s191_s15 = scalar_lea.sflag [#allocation4], %s834_s6  ;;  %s586_s16 = scalar_lea.hbm %s843_s11, 256 }
  0x1c   : > { %p587_p2 = scmp.ne.s32.totalorder %s843_s11, %s586_s16  ;;  %p588_p3 = pneg %p851_p0 }
  0x1d   : > { %s591_s25 = scalar_lea.hbm %s1016_s1, 512  ;;  %p592_p4 = scmp.lt.u32.totalorder %s843_s11, %s1016_s1 }
  0x1e   : > { %p589_p5 = pnand %p588_p3, %p587_p2  ;;  %p593_p7 = scmp.lt.u32.totalorder %s591_s25, %s586_s16 }
  0x1f   : > { %p595_p13 = scmp.lt.u32.totalorder %s586_s16, %s843_s11 }
  0x20   : > { %p590_p6 = pneg %p589_p5  ;;  %p594_p10 = por %p593_p7, %p592_p4 }
  0x22   : > { %p596_p12 = por %p595_p13, %p594_p10 }
  0x24   : > { %p597_p1 = pnand %p596_p12, %p590_p6 }
  0x26   : > { %600 = shalt.err (!%p597_p1)
}
  0x27   : > { %s601_s9 = scalar_lea.vmem %s847_s13, 256  ;;  %s734_s10 = smov [#allocation3]  }
  0x28   : > { %p602_p2 = scmp.ne.s32.totalorder %s847_s13, %s601_s9  ;;  %s606_s12 = sshll.u32 %s734_s10, 4  ;;  %s607_s12 = int_to_ptr.vmem [resolvable:$false] %s606_s12 }
  0x29   : > { %s608_s0 = scalar_lea.vmem %s607_s12, 512  ;;  %p609_p9 = scmp.lt.s32.totalorder %s847_s13, %s607_s12 }
  0x2a   : > { %p604_p5 = pnand %p602_p2, %p588_p3  ;;  %p610_p4 = scmp.lt.s32.totalorder %s608_s0, %s601_s9 }
  0x2c   : > { %p605_p11 = pneg %p604_p5  ;;  %p611_p7 = por %p610_p4, %p609_p9 }
  0x2e   : > { %p612_p10 = pnand %p611_p7, %p605_p11 }
  0x30   : > { %615 = shalt.err (!%p612_p10)
}
  0x31   : > { %s735_s16 = smov 64   ;;  %s736_s23 = smov 4  }
  0x32   : > { %524 = dma.hbm_to_vmem [thread:$0]  (!%p851_p0), %s843_s11, 256, %s847_s13, %s191_s15, %s735_s16, %s735_s16, %s736_s23  }
  0x33   : > { %p245_p9 = scmp.lt.s32.totalorder %s732_s22, 3  ;;  %s893_s27 = scalar_lea.hbm %s1017_s2, %s512_s8 }
  0x34   : > { %p1027_p11 = scmp.ge.s32.totalorder %s732_s22, 1  ;;  %s217_s10 = scalar_lea.vmem [#allocation6], %s496_s7 }
  0x35   : > { %s226_s12 = sshll.u32 %s217_s10, 4  ;;  %s214_s11 = scalar_lea.sflag [#allocation7], %s834_s6  ;;  %s903_s12 = int_to_ptr.vmem [resolvable:$true] %s226_s12 }
  0x36   : > { %p897_p12 = pnand %p1027_p11, %p245_p9  ;;  %s616_s13 = scalar_lea.hbm %s893_s27, 256 }
  0x37   : > { %p617_p1 = scmp.ne.s32.totalorder %s893_s27, %s616_s13  ;;  %s621_s0 = scalar_lea.hbm %s1017_s2, 512 }
  0x38   : > { %p622_p2 = scmp.lt.u32.totalorder %s893_s27, %s1017_s2  ;;  %p623_p5 = scmp.lt.u32.totalorder %s621_s0, %s616_s13 }
  0x39   : > { %p619_p6 = pnand %p617_p1, %p588_p3  ;;  %p625_p7 = scmp.lt.u32.totalorder %s616_s13, %s893_s27 }
  0x3a   : > { %p624_p4 = por %p623_p5, %p622_p2 }
  0x3b   : > { %p620_p13 = pneg %p619_p6 }
  0x3c   : > { %p626_p10 = por %p625_p7, %p624_p4 }
  0x3e   : > { %p627_p9 = pnand %p626_p10, %p620_p13 }
  0x40   : > { %630 = shalt.err (!%p627_p9)
}
  0x41   : > { %s631_s7 = scalar_lea.vmem %s903_s12, 256  ;;  %s737_s10 = smov [#allocation6]  }
  0x42   : > { %p632_p11 = scmp.ne.s32.totalorder %s903_s12, %s631_s7  ;;  %s636_s8 = sshll.u32 %s737_s10, 4  ;;  %s637_s8 = int_to_ptr.vmem [resolvable:$false] %s636_s8 }
  0x43   : > { %s638_s15 = scalar_lea.vmem %s637_s8, 512  ;;  %p639_p8 = scmp.lt.s32.totalorder %s903_s12, %s637_s8 }
  0x44   : > { %p634_p1 = pnand %p632_p11, %p588_p3  ;;  %p640_p2 = scmp.lt.s32.totalorder %s638_s15, %s631_s7 }
  0x46   : > { %p635_p6 = pneg %p634_p1  ;;  %p641_p5 = por %p640_p2, %p639_p8 }
  0x48   : > { %p642_p4 = pnand %p641_p5, %p635_p6 }
  0x4a   : > { %645 = shalt.err (!%p642_p4)
}
  0x4b   : > { %527 = dma.hbm_to_vmem [thread:$0]  (!%p851_p0), %s893_s27, 256, %s903_s12, %s214_s11, %s735_s16, %s735_s16, %s736_s23  }
  0x4c   : > { %249 = sbr.rel (%p897_p12) target bundleno = 117 (0x75), region = 36  ;;  %s937_s13 = sand.u32 (!%p897_p12), 1, %s716_s18  }
  0x4d   : > { %s940_s0 = sshll.u32 (!%p897_p12), %s937_s13, 4  ;;  %s252_s14 = scalar_lea.sflag (!%p897_p12), [#allocation4], %s937_s13 }
  0x4e   : > { %s255_s25 = scalar_lea.vmem (!%p897_p12), [#allocation3], %s940_s0  ;;  %p1029_p8 = scmp.ne.s32.totalorder (!%p897_p12), %s1023_s28, 0 }
  0x53   : > { %699 = dma.done.wait (%p1029_p8), %s252_s14, 256  }
  0x54   : > { %701 = vsyncadd (%p1029_p8), %s252_s14, 4294967040  ;;  %s261_s6 = scalar_lea.sflag [#allocation7], %s937_s13  ;;  %s264_s16 = scalar_lea.vmem [#allocation6], %s940_s0 }
  0x55   : > { %703 = dma.done.wait (%p1029_p8), %s261_s6, 256  }
  0x56   : > { %705 = vsyncadd (%p1029_p8), %s261_s6, 4294967040  ;;  %p302_p0 = scmp.lt.s32.totalorder %s724_s20, 1  ;;  %s310_s27 = sld [smem:[#allocation2]]  ;;  %v311_v0 = vld [vmem:[%s255_s25] sm:$0xf]  ;;  %v337_v7 = vlaneseq }
  0x57   : > { %v315_v1 = vld [vmem:[%s264_s16] sm:$0xf]  ;;  %v312_v4 = vld [vmem:[%s255_s25 + $0x4] sm:$0xf]  ;;  %v313_v6 = vld [vmem:[%s255_s25 + $0x8] sm:$0xf] }
  0x58   : > { %s303_s23 = scalar_select %p302_p0, %s724_s20, 1  ;;  %v320_v3 = vsub.f32 %v315_v1, %v311_v0  ;;  %v316_v5 = vld [vmem:[%s264_s16 + $0x4] sm:$0xf]  ;;  %v317_v9 = vld [vmem:[%s264_s16 + $0x8] sm:$0xf]  ;;  %vm339_vm0 = vcmp.lt.s32.totalorder %v337_v7, 512 }
  0x59   : > { %v321_v8 = vsub.f32 %v316_v5, %v312_v4  ;;  %v314_v10 = vld [vmem:[%s255_s25 + $0xc] sm:$0xf]  ;;  %v322_v13 = vsub.f32 %v317_v9, %v313_v6  ;;  %s301_s28 = scalar_lea.vmem [#allocation8], %s940_s0  ;;  %s514_s10 = sshll.u32 %s724_s20, 8 }
  0x5a   : > { %s506_s9 = sshll.u32 %s303_s23, 2  ;;  %v318_v11 = vld [vmem:[%s264_s16 + $0xc] sm:$0xf]  ;;  %s361_s7 = sshll.u32 %s301_s28, 4  ;;  %s961_s7 = int_to_ptr.vmem [resolvable:$true] %s361_s7 }
  0x5b   : > { %s309_s26 = scalar_lea.vmem %s1018_s3, %s506_s9  ;;  %v323_v14 = vsub.f32 %v318_v11, %v314_v10  ;;  %s966_s0 = scalar_lea.hbm %s1019_s4, %s514_s10 }
  0x5c   : > { %v319_v2 = vld [vmem:[%s309_s26] sm:$0xf]  ;;  %v332_v15 = vstv %s310_s27  ;;  %s346_s20 = scalar_lea.sflag [#allocation5], %s937_s13  ;;  %s646_s14 = scalar_lea.vmem %s961_s7, 256 }
  0x5d   : > { %v324_v12 = vmul.f32 %v320_v3, %v319_v2  ;;  %v325_v16 = vmul.f32 %v321_v8, %v319_v2  ;;  %v326_v18 = vmul.f32 %v322_v13, %v319_v2  ;;  %v327_v19 = vmul.f32 %v323_v14, %v319_v2  ;;  %p647_p3 = scmp.ne.s32.totalorder %s961_s7, %s646_s14  ;;  %p1030_p12 = scmp.ne.s32.totalorder %s1024_s29, 0 }
  0x5e   : > { %s738_s25 = smov [#allocation8]  }
  0x5f   : > { %v328_v17 = vadd.f32 %v324_v12, %v311_v0  ;;  %v329_v20 = vadd.f32 %v325_v16, %v312_v4  ;;  %v330_v22 = vadd.f32 %v326_v18, %v313_v6  ;;  %v331_v23 = vadd.f32 %v327_v19, %v314_v10  ;;  %p648_p13 = pnand %p647_p3, %p1030_p12  ;;  %s650_s6 = sshll.u32 %s738_s25, 4  ;;  %s651_s6 = int_to_ptr.vmem [resolvable:$false] %s650_s6 }
  0x60   : > { %s652_s16 = scalar_lea.vmem %s651_s6, 512  ;;  %p653_p10 = scmp.lt.s32.totalorder %s961_s7, %s651_s6 }
  0x61   : > { %v333_v21 = vmul.f32 %v332_v15, %v328_v17  ;;  %v334_v24 = vmul.f32 %v332_v15, %v329_v20  ;;  %v335_v25 = vmul.f32 %v332_v15, %v330_v22  ;;  %v336_v26 = vmul.f32 %v332_v15, %v331_v23  ;;  %p649_p7 = pneg %p648_p13  ;;  %p654_p9 = scmp.lt.s32.totalorder %s652_s16, %s646_s14 }
  0x63   : > { %341 = vst.msk [vmem:[%s301_s28] sm:$0xf] %vm339_vm0, %v333_v21  ;;  %342 = vst.msk [vmem:[%s301_s28 + $0x4] sm:$0xf] %vm339_vm0, %v334_v24  ;;  %p655_p11 = por %p654_p9, %p653_p10 }
  0x64   : > { %343 = vst.msk [vmem:[%s301_s28 + $0x8] sm:$0xf] %vm339_vm0, %v335_v25  ;;  %344 = vst.msk [vmem:[%s301_s28 + $0xc] sm:$0xf] %vm339_vm0, %v336_v26 }
  0x65   : > { %p656_p1 = pnand %p655_p11, %p649_p7 }
  0x67   : > { %659 = shalt.err (!%p656_p1)
}
  0x68   : > { %s660_s23 = scalar_lea.hbm %s966_s0, 256  ;;  %s664_s12 = scalar_lea.hbm %s1019_s4, 512 }
  0x69   : > { %p661_p6 = scmp.ne.s32.totalorder %s966_s0, %s660_s23  ;;  %p665_p4 = scmp.lt.u32.totalorder %s966_s0, %s1019_s4 }
  0x6a   : > { %p666_p8 = scmp.lt.u32.totalorder %s664_s12, %s660_s23  ;;  %p668_p3 = scmp.lt.u32.totalorder %s660_s23, %s966_s0 }
  0x6b   : > { %p662_p2 = pnand %p661_p6, %p1030_p12 }
  0x6c   : > { %p667_p0 = por %p666_p8, %p665_p4 }
  0x6d   : > { %p663_p5 = pneg %p662_p2 }
  0x6e   : > { %p669_p13 = por %p668_p3, %p667_p0 }
  0x70   : > { %p670_p7 = pnand %p669_p13, %p663_p5 }
  0x72   : > { %673 = shalt.err (!%p670_p7)
}
  0x73   : > { %s739_s28 = smov 64   ;;  %s740_s10 = smov 4  }
  0x74   : > { %519 = dma.vmem_to_hbm [thread:$0]  (%p1030_p12), %s961_s7, 256, %s966_s0, %s346_s20, %s739_s28, %s739_s28, %s740_s10  }
  0x75 PF: > { %s376_s8 = sand.u32 1, %s712_s17   ;;  %p1031_p10 = scmp.ne.s32.totalorder %s1025_s5, 0 }
  0x76   : > { %p1032_p9 = scmp.ge.s32.totalorder %s732_s22, 2  ;;  %s377_s15 = scalar_lea.sflag [#allocation5], %s376_s8 }
  0x78   : > { %p529_p11 = pnand %p1032_p9, %p1031_p10 }
  0x7a   : > { %707 = dma.done.wait (!%p529_p11), %s377_s15, 256  }
  0x7b   : > { %709 = vsyncadd (!%p529_p11), %s377_s15, 4294967040  ;;  %s24_s22 = sadd.s32 1, %s732_s22   ;;  %s1033_s17 = smov %s716_s18 }
  0x7c   : > { %p21_p1 = scmp.ge.s32.totalorder %s24_s22, 4   ;;  %s1034_s18 = smov %s720_s19 }
  0x7d   : > { %s1035_s19 = smov %s825_s30  ;;  %s1036_s20 = smov %s728_s21 }
  0x7e   : > { %s1037_s21 = smov %s1039_s24  ;;  %23 = sbr.rel (!%p21_p1) target bundleno = 10 (0xa), region = 97 }
  0x85   :  { %382 = vsyncpa [#allocation4], 1 }
  0x86   :  { %384 = vsyncpa [#allocation4 + $0x1], 1 }
  0x87   :  { %385 = vsyncpa [#allocation7], 1 }
  0x88   :  { %387 = vsyncpa [#allocation7 + $0x1], 1 }
  0x89   :  { %388 = vsyncpa [#allocation5], 1 }
  0x8a   :  { %390 = vsyncpa [#allocation5 + $0x1], 1 }

</bundles_post_ra>
